<compile_context>
chip_gen: v7x
topology: tpu7x:2x2x1
jax: 0.10.0
libtpu: 0.0.40
codegen_flags: <defaults>
</compile_context>

<pallas_src>
import functools

import jax
import jax.numpy as jnp
import numpy as np
from jax.experimental import pallas as pl
from jax.experimental.pallas import tpu as pltpu


def _round_up(n, m):
    return (n + m - 1) // m * m


def _wdlp_kernel(labels_ref, x1_ref, x2_ref, y_ref,
                 w1_ref, b1_ref, w2_ref, b2_ref,
                 out_ref, acc_a_ref, acc_y_ref, cnt_ref, *, num_groups):
    """One grid step processes one batch tile; group sums accumulate in VMEM."""
    i = pl.program_id(0)

    @pl.when(i == 0)
    def _init():
        acc_a_ref[...] = jnp.zeros_like(acc_a_ref)
        acc_y_ref[...] = jnp.zeros_like(acc_y_ref)
        cnt_ref[...] = jnp.zeros_like(cnt_ref)

    x1 = x1_ref[...]            # (TB, D1) f32
    x2 = x2_ref[...]            # (TB, D2) f32
    y = y_ref[...]              # (TB, Y)  f32
    labels = labels_ref[...]    # (1, TB)  i32  (group inverse index; ==G marks padding)

    # gate = sigmoid(linear(x2)): w1 is passed as a (1, D2) row, so this is a
    # VPU broadcast multiply + lane reduce (not an N=1 MXU matmul); b1 is a
    # scalar read from SMEM.
    gate_logit = jnp.sum(x2 * w1_ref[...], axis=-1, keepdims=True) + b1_ref[0, 0]
    a = jax.nn.sigmoid(gate_logit) * x1                                  # (TB, D1)

    # Group scatter-add expressed as a one-hot matmul on the MXU.  Padded rows
    # carry label == num_groups, so their one-hot row is all zero and they
    # contribute to neither the sums nor the counts.
    tb = x1.shape[0]
    g_ids = jax.lax.broadcasted_iota(jnp.int32, (num_groups, tb), 0)     # (G, TB)
    onehot = (g_ids == labels).astype(jnp.float32)                       # (G, TB)

    acc_a_ref[...] += jnp.dot(onehot, a, preferred_element_type=jnp.float32)
    acc_y_ref[...] += jnp.dot(onehot, y, preferred_element_type=jnp.float32)
    cnt_ref[...] += jnp.sum(onehot, axis=1, keepdims=True)

    @pl.when(i == pl.num_programs(0) - 1)
    def _finalize():
        # counts >= 1 for valid unique-inverse labels; the max() only guards a
        # pathological num_groups overshoot from turning the loss into NaN.
        inv = 1.0 / jnp.maximum(cnt_ref[...], 1.0)                       # (G, 1)
        res = acc_a_ref[...] * inv                                       # (G, D1) group means
        y_grp = acc_y_ref[...] * inv                                     # (G, Y)  group targets

        logits = jnp.dot(res, w2_ref[...],
                         preferred_element_type=jnp.float32) + b2_ref[...]   # (G, Y)
        pred = jax.nn.softmax(logits, axis=1)
        # nn.CrossEntropyLoss on the already-softmaxed prediction with soft
        # targets ("double softmax", reproduced intentionally), mean over groups.
        logp = jax.nn.log_softmax(pred, axis=1)
        per_group = -jnp.sum(y_grp * logp, axis=1, keepdims=True)            # (G, 1)
        out_ref[0, 0] = jnp.sum(per_group) / jnp.float32(num_groups)


def wdlp_forward(x1, x2, labels_inv, y, params, num_groups, *, block_b=512):
    """Pallas-backed forward.

    `labels_inv` are sorted-unique inverse indices of the raw group labels
    (torch.unique equivalent), computed in NumPy/JAX glue outside the kernel.
    """
    w1, b1, w2, b2 = params
    B, d1 = x1.shape
    d2 = x2.shape[1]
    y_dim = y.shape[1]
    G = int(num_groups)

    # Batch tile: small batches run as a single block (padded to a sublane
    # multiple); larger batches use a multiple of 128 so the label row can be
    # blocked along the lane axis and the MXU contraction (batch axis of the
    # one-hot matmul) is well filled.  On v7x (64 MiB VMEM) pass a smaller
    # block_b if feature dims are large.
    if B <= block_b:
        tb = _round_up(B, 8)
    else:
        tb = _round_up(block_b, 128)
    b_pad = _round_up(B, tb)

    pad = b_pad - B
    labels_i32 = labels_inv.astype(jnp.int32)
    if pad:
        x1 = jnp.pad(x1, ((0, pad), (0, 0)))
        x2 = jnp.pad(x2, ((0, pad), (0, 0)))
        y = jnp.pad(y, ((0, pad), (0, 0)))
        labels_i32 = jnp.pad(labels_i32, (0, pad), constant_values=G)  # out of range
    labels_row = labels_i32.reshape(1, b_pad)

    w1_row = jnp.asarray(w1, jnp.float32).reshape(1, d2)   # (D2, 1) -> (1, D2)
    b1_s = jnp.asarray(b1, jnp.float32).reshape(1, 1)
    w2_m = jnp.asarray(w2, jnp.float32).reshape(d1, y_dim)
    b2_r = jnp.asarray(b2, jnp.float32).reshape(1, y_dim)

    grid = (b_pad // tb,)
    kernel = functools.partial(_wdlp_kernel, num_groups=G)
    smem = pltpu.MemorySpace.SMEM

    out = pl.pallas_call(
        kernel,
        out_shape=jax.ShapeDtypeStruct((1, 1), jnp.float32),
        grid=grid,
        in_specs=[
            pl.BlockSpec((1, tb), lambda i: (0, i)),                 # labels (lane axis = B)
            pl.BlockSpec((tb, d1), lambda i: (i, 0)),                # x1
            pl.BlockSpec((tb, d2), lambda i: (i, 0)),                # x2
            pl.BlockSpec((tb, y_dim), lambda i: (i, 0)),             # y
            pl.BlockSpec((1, d2), lambda i: (0, 0)),                 # w1 row (resident)
            pl.BlockSpec((1, 1), lambda i: (0, 0), memory_space=smem),   # b1 scalar
            pl.BlockSpec((d1, y_dim), lambda i: (0, 0)),             # w2 (resident)
            pl.BlockSpec((1, y_dim), lambda i: (0, 0)),              # b2 (resident)
        ],
        out_specs=pl.BlockSpec((1, 1), lambda i: (0, 0), memory_space=smem),  # loss
        scratch_shapes=[
            pltpu.VMEM((G, d1), jnp.float32),                        # group sum of gated x1
            pltpu.VMEM((G, y_dim), jnp.float32),                     # group sum of y
            pltpu.VMEM((G, 1), jnp.float32),                         # group counts
        ],
        compiler_params=pltpu.CompilerParams(
            dimension_semantics=("arbitrary",),   # accumulators carry across B tiles
        ),
    )(labels_row, x1, x2, y, w1_row, b1_s, w2_m, b2_r)
    return out[0, 0]


def _reference_forward(x1, x2, labels_inv, y, params, num_groups):
    """Pure-JAX reference mirroring the PyTorch forward (for verification)."""
    w1, b1, w2, b2 = params
    hp = jax.lax.Precision.HIGHEST
    gate = jax.nn.sigmoid(jnp.dot(x2, w1, precision=hp) + b1)
    a = gate * x1
    G = int(num_groups)
    M = (jnp.arange(G)[:, None] == labels_inv[None, :]).astype(jnp.float32)
    counts = M.sum(axis=1, keepdims=True)
    res = jnp.dot(M, a, precision=hp) / counts
    y_grp = jnp.dot(M, y, precision=hp) / counts
    pred = jax.nn.softmax(jnp.dot(res, w2, precision=hp) + b2, axis=1)
    logp = jax.nn.log_softmax(pred, axis=1)
    return jnp.mean(-jnp.sum(y_grp * logp, axis=1))


if __name__ == "__main__":
    # Small, module-consistent shapes.
    B, X1_DIM, X2_DIM, Y_DIM = 8, 32, 16, 4

    key = jax.random.PRNGKey(0)
    k_x1, k_x2, k_w1, k_b1, k_w2, k_b2, k_y = jax.random.split(key, 7)

    x1 = jax.random.normal(k_x1, (B, X1_DIM), dtype=jnp.float32)
    x2 = jax.random.normal(k_x2, (B, X2_DIM), dtype=jnp.float32)

    # nn.Linear-style deterministic parameter init.
    bound1 = 1.0 / np.sqrt(X2_DIM)
    w1 = jax.random.uniform(k_w1, (X2_DIM, 1), jnp.float32, -bound1, bound1)
    b1 = jax.random.uniform(k_b1, (1, 1), jnp.float32, -bound1, bound1)
    bound2 = 1.0 / np.sqrt(X1_DIM)
    w2 = jax.random.uniform(k_w2, (X1_DIM, Y_DIM), jnp.float32, -bound2, bound2)
    b2 = jax.random.uniform(k_b2, (1, Y_DIM), jnp.float32, -bound2, bound2)
    params = (w1, b1, w2, b2)

    # Group labels + one-hot targets; torch.unique equivalent done in NumPy glue.
    raw_labels = np.array([5, 2, 5, 7, 2, 2, 7, 5], dtype=np.int64)
    unique, labels_inv_np = np.unique(raw_labels, return_inverse=True)  # sorted unique
    num_groups = int(unique.shape[0])
    labels_inv = jnp.asarray(labels_inv_np, dtype=jnp.int32)

    y_classes = jax.random.randint(k_y, (B,), 0, Y_DIM)
    y = jax.nn.one_hot(y_classes, Y_DIM, dtype=jnp.float32)

    loss = wdlp_forward(x1, x2, labels_inv, y, params, num_groups)
    jax.block_until_ready(loss)
    ref = _reference_forward(x1, x2, labels_inv, y, params, num_groups)
    np.testing.assert_allclose(np.asarray(loss), np.asarray(ref), rtol=1e-4, atol=1e-5)

    # Second, still-small case that exercises the batch-tiled accumulator path
    # (grid of 2 steps, tb=128) and the batch-padding path (250 -> 256).
    B2 = 250
    k2 = jax.random.split(jax.random.PRNGKey(1), 4)
    x1b = jax.random.normal(k2[0], (B2, X1_DIM), dtype=jnp.float32)
    x2b = jax.random.normal(k2[1], (B2, X2_DIM), dtype=jnp.float32)
    raw_b = np.asarray(jax.random.randint(k2[2], (B2,), 0, 11))
    uniq_b, inv_b_np = np.unique(raw_b, return_inverse=True)
    inv_b = jnp.asarray(inv_b_np, dtype=jnp.int32)
    yb = jax.nn.one_hot(jax.random.randint(k2[3], (B2,), 0, Y_DIM), Y_DIM,
                        dtype=jnp.float32)

    loss_b = wdlp_forward(x1b, x2b, inv_b, yb, params, int(uniq_b.shape[0]),
                          block_b=128)
    jax.block_until_ready(loss_b)
    ref_b = _reference_forward(x1b, x2b, inv_b, yb, params, int(uniq_b.shape[0]))
    np.testing.assert_allclose(np.asarray(loss_b), np.asarray(ref_b),
                               rtol=1e-4, atol=1e-5)

    print("KERNEL_OK")
</pallas_src>

<mosaic_0001>
module attributes {stable_mosaic.version = 11 : i64} {
  func.func @_wdlp_kernel(%arg0: i32, %arg1: memref<1x8xi32, #tpu.memory_space<vmem>>, %arg2: memref<8x32xf32, #tpu.memory_space<vmem>>, %arg3: memref<8x16xf32, #tpu.memory_space<vmem>>, %arg4: memref<8x4xf32, #tpu.memory_space<vmem>>, %arg5: memref<1x16xf32, #tpu.memory_space<vmem>>, %arg6: memref<1x1xf32, #tpu.memory_space<smem>>, %arg7: memref<32x4xf32, #tpu.memory_space<vmem>>, %arg8: memref<1x4xf32, #tpu.memory_space<vmem>>, %arg9: memref<1x1xf32, #tpu.memory_space<smem>>, %arg10: memref<3x32xf32, #tpu.memory_space<vmem>>, %arg11: memref<3x4xf32, #tpu.memory_space<vmem>>, %arg12: memref<3x1xf32, #tpu.memory_space<vmem>>) attributes {dimension_semantics = [#tpu.dimension_semantics<arbitrary>], iteration_bounds = array<i64: 1>, scalar_prefetch = 0 : i64, scratch_operands = 3 : i64, tpu.core_type = #tpu.core_type<tc>, window_params = [{transform_indices = @transform_0, window_bounds = array<i64: 1, 8>}, {transform_indices = @transform_1, window_bounds = array<i64: 8, 32>}, {transform_indices = @transform_2, window_bounds = array<i64: 8, 16>}, {transform_indices = @transform_3, window_bounds = array<i64: 8, 4>}, {pipeline_mode = #tpu.pipeline_mode<synchronous>, transform_indices = @transform_4, window_bounds = array<i64: 1, 16>}, {transform_indices = @transform_5, window_bounds = array<i64: 1, 1>}, {pipeline_mode = #tpu.pipeline_mode<synchronous>, transform_indices = @transform_6, window_bounds = array<i64: 32, 4>}, {pipeline_mode = #tpu.pipeline_mode<synchronous>, transform_indices = @transform_7, window_bounds = array<i64: 1, 4>}, {transform_indices = @transform_8, window_bounds = array<i64: 1, 1>}]} {
    %c0_i32 = arith.constant 0 : i32
    %0 = arith.cmpi eq, %arg0, %c0_i32 : i32
    %1 = arith.extui %0 : i1 to i32
    %c0_i32_0 = arith.constant 0 : i32
    %2 = arith.cmpi ne, %1, %c0_i32_0 : i32
    scf.if %2 {
      %cst_30 = arith.constant 0.000000e+00 : f32
      %43 = vector.broadcast %cst_30 : f32 to vector<3x32xf32>
      %c0_31 = arith.constant 0 : index
      %c0_32 = arith.constant 0 : index
      %44 = vector.load %arg10[%c0_31, %c0_32] : memref<3x32xf32, #tpu.memory_space<vmem>>, vector<3x32xf32>
      tpu.vector_store %arg10[%c0_31, %c0_32], %43 {strides = array<i32>} : memref<3x32xf32, #tpu.memory_space<vmem>>, vector<3x32xf32>,
      %cst_33 = arith.constant 0.000000e+00 : f32
      %45 = vector.broadcast %cst_33 : f32 to vector<3x4xf32>
      %c0_34 = arith.constant 0 : index
      %c0_35 = arith.constant 0 : index
      %46 = vector.load %arg11[%c0_34, %c0_35] : memref<3x4xf32, #tpu.memory_space<vmem>>, vector<3x4xf32>
      tpu.vector_store %arg11[%c0_34, %c0_35], %45 {strides = array<i32>} : memref<3x4xf32, #tpu.memory_space<vmem>>, vector<3x4xf32>,
      %cst_36 = arith.constant 0.000000e+00 : f32
      %47 = vector.broadcast %cst_36 : f32 to vector<3x1xf32>
      %c0_37 = arith.constant 0 : index
      %c0_38 = arith.constant 0 : index
      %48 = vector.load %arg12[%c0_37, %c0_38] : memref<3x1xf32, #tpu.memory_space<vmem>>, vector<3x1xf32>
      tpu.vector_store %arg12[%c0_37, %c0_38], %47 {strides = array<i32>} : memref<3x1xf32, #tpu.memory_space<vmem>>, vector<3x1xf32>,
    } else {
    }
    %c0 = arith.constant 0 : index
    %c0_1 = arith.constant 0 : index
    %3 = vector.load %arg2[%c0, %c0_1] : memref<8x32xf32, #tpu.memory_space<vmem>>, vector<8x32xf32>
    %c0_2 = arith.constant 0 : index
    %c0_3 = arith.constant 0 : index
    %4 = vector.load %arg3[%c0_2, %c0_3] : memref<8x16xf32, #tpu.memory_space<vmem>>, vector<8x16xf32>
    %c0_4 = arith.constant 0 : index
    %c0_5 = arith.constant 0 : index
    %5 = vector.load %arg4[%c0_4, %c0_5] : memref<8x4xf32, #tpu.memory_space<vmem>>, vector<8x4xf32>
    %c0_6 = arith.constant 0 : index
    %c0_7 = arith.constant 0 : index
    %6 = vector.load %arg1[%c0_6, %c0_7] : memref<1x8xi32, #tpu.memory_space<vmem>>, vector<1x8xi32>
    %c0_8 = arith.constant 0 : index
    %c0_9 = arith.constant 0 : index
    %7 = vector.load %arg5[%c0_8, %c0_9] : memref<1x16xf32, #tpu.memory_space<vmem>>, vector<1x16xf32>
    %8 = vector.broadcast %7 : vector<1x16xf32> to vector<8x16xf32>
    %9 = arith.mulf %4, %8 : vector<8x16xf32>
    %cst = arith.constant dense<0.000000e+00> : vector<8xf32>
    %10 = vector.multi_reduction <add>, %9, %cst [1] : vector<8x16xf32> to vector<8xf32>
    %11 = vector.shape_cast %10 : vector<8xf32> to vector<8x1xf32>
    %c0_10 = arith.constant 0 : index
    %c0_11 = arith.constant 0 : index
    %12 = memref.load %arg6[%c0_10, %c0_11] : memref<1x1xf32, #tpu.memory_space<smem>>
    %13 = vector.broadcast %12 : f32 to vector<8x1xf32>
    %14 = arith.addf %11, %13 : vector<8x1xf32>
    %15 = arith.negf %14 : vector<8x1xf32>
    %16 = math.exp %15 : vector<8x1xf32>
    %cst_12 = arith.constant 1.000000e+00 : f32
    %17 = vector.broadcast %cst_12 : f32 to vector<8x1xf32>
    %18 = arith.addf %17, %16 : vector<8x1xf32>
    %19 = arith.divf %17, %18 : vector<8x1xf32>
    %20 = vector.broadcast %19 : vector<8x1xf32> to vector<8x32xf32>
    %21 = arith.mulf %20, %3 : vector<8x32xf32>
    %22 = tpu.iota {dimensions = array<i32: 0>} : vector<3x8xi32>
    %23 = vector.broadcast %6 : vector<1x8xi32> to vector<3x8xi32>
    %24 = arith.cmpi eq, %22, %23 : vector<3x8xi32>
    %25 = arith.extui %24 : vector<3x8xi1> to vector<3x8xi32>
    %26 = arith.sitofp %25 : vector<3x8xi32> to vector<3x8xf32>
    %c0_13 = arith.constant 0 : index
    %c0_14 = arith.constant 0 : index
    %27 = vector.load %arg10[%c0_13, %c0_14] : memref<3x32xf32, #tpu.memory_space<vmem>>, vector<3x32xf32>
    %cst_15 = arith.constant dense<0.000000e+00> : vector<3x32xf32>
    %28 = tpu.matmul %26, %21, %cst_15 {dimension_numbers = #tpu.dot_dimension_numbers<[1], [0], [0], [1], [0, 0, 1, 1], [], []>} : vector<3x8xf32>, vector<8x32xf32>, vector<3x32xf32> -> vector<3x32xf32>
    %29 = arith.addf %27, %28 : vector<3x32xf32>
    %c0_16 = arith.constant 0 : index
    %c0_17 = arith.constant 0 : index
    %30 = vector.load %arg10[%c0_16, %c0_17] : memref<3x32xf32, #tpu.memory_space<vmem>>, vector<3x32xf32>
    tpu.vector_store %arg10[%c0_16, %c0_17], %29 {strides = array<i32>} : memref<3x32xf32, #tpu.memory_space<vmem>>, vector<3x32xf32>,
    %c0_18 = arith.constant 0 : index
    %c0_19 = arith.constant 0 : index
    %31 = vector.load %arg11[%c0_18, %c0_19] : memref<3x4xf32, #tpu.memory_space<vmem>>, vector<3x4xf32>
    %cst_20 = arith.constant dense<0.000000e+00> : vector<3x4xf32>
    %32 = tpu.matmul %26, %5, %cst_20 {dimension_numbers = #tpu.dot_dimension_numbers<[1], [0], [0], [1], [0, 0, 1, 1], [], []>} : vector<3x8xf32>, vector<8x4xf32>, vector<3x4xf32> -> vector<3x4xf32>
    %33 = arith.addf %31, %32 : vector<3x4xf32>
    %c0_21 = arith.constant 0 : index
    %c0_22 = arith.constant 0 : index
    %34 = vector.load %arg11[%c0_21, %c0_22] : memref<3x4xf32, #tpu.memory_space<vmem>>, vector<3x4xf32>
    tpu.vector_store %arg11[%c0_21, %c0_22], %33 {strides = array<i32>} : memref<3x4xf32, #tpu.memory_space<vmem>>, vector<3x4xf32>,
    %c0_23 = arith.constant 0 : index
    %c0_24 = arith.constant 0 : index
    %35 = vector.load %arg12[%c0_23, %c0_24] : memref<3x1xf32, #tpu.memory_space<vmem>>, vector<3x1xf32>
    %cst_25 = arith.constant dense<0.000000e+00> : vector<3xf32>
    %36 = vector.multi_reduction <add>, %26, %cst_25 [1] : vector<3x8xf32> to vector<3xf32>
    %37 = vector.shape_cast %36 : vector<3xf32> to vector<3x1xf32>
    %38 = arith.addf %35, %37 : vector<3x1xf32>
    %c0_26 = arith.constant 0 : index
    %c0_27 = arith.constant 0 : index
    %39 = vector.load %arg12[%c0_26, %c0_27] : memref<3x1xf32, #tpu.memory_space<vmem>>, vector<3x1xf32>
    tpu.vector_store %arg12[%c0_26, %c0_27], %38 {strides = array<i32>} : memref<3x1xf32, #tpu.memory_space<vmem>>, vector<3x1xf32>,
    %c0_i32_28 = arith.constant 0 : i32
    %40 = arith.cmpi eq, %arg0, %c0_i32_28 : i32
    %41 = arith.extui %40 : i1 to i32
    %c0_i32_29 = arith.constant 0 : i32
    %42 = arith.cmpi ne, %41, %c0_i32_29 : i32
    scf.if %42 {
      %c0_30 = arith.constant 0 : index
      %c0_31 = arith.constant 0 : index
      %43 = vector.load %arg12[%c0_30, %c0_31] : memref<3x1xf32, #tpu.memory_space<vmem>>, vector<3x1xf32>
      %cst_32 = arith.constant 1.000000e+00 : f32
      %44 = vector.broadcast %cst_32 : f32 to vector<3x1xf32>
      %45 = arith.maximumf %43, %44 : vector<3x1xf32>
      %cst_33 = arith.constant 1.000000e+00 : f32
      %46 = vector.broadcast %cst_33 : f32 to vector<3x1xf32>
      %47 = arith.divf %46, %45 : vector<3x1xf32>
      %c0_34 = arith.constant 0 : index
      %c0_35 = arith.constant 0 : index
      %48 = vector.load %arg10[%c0_34, %c0_35] : memref<3x32xf32, #tpu.memory_space<vmem>>, vector<3x32xf32>
      %49 = vector.broadcast %47 : vector<3x1xf32> to vector<3x32xf32>
      %50 = arith.mulf %48, %49 : vector<3x32xf32>
      %c0_36 = arith.constant 0 : index
      %c0_37 = arith.constant 0 : index
      %51 = vector.load %arg11[%c0_36, %c0_37] : memref<3x4xf32, #tpu.memory_space<vmem>>, vector<3x4xf32>
      %52 = vector.broadcast %47 : vector<3x1xf32> to vector<3x4xf32>
      %53 = arith.mulf %51, %52 : vector<3x4xf32>
      %c0_38 = arith.constant 0 : index
      %c0_39 = arith.constant 0 : index
      %54 = vector.load %arg7[%c0_38, %c0_39] : memref<32x4xf32, #tpu.memory_space<vmem>>, vector<32x4xf32>
      %cst_40 = arith.constant dense<0.000000e+00> : vector<3x4xf32>
      %55 = tpu.matmul %50, %54, %cst_40 {dimension_numbers = #tpu.dot_dimension_numbers<[1], [0], [0], [1], [0, 0, 1, 1], [], []>} : vector<3x32xf32>, vector<32x4xf32>, vector<3x4xf32> -> vector<3x4xf32>
      %c0_41 = arith.constant 0 : index
      %c0_42 = arith.constant 0 : index
      %56 = vector.load %arg8[%c0_41, %c0_42] : memref<1x4xf32, #tpu.memory_space<vmem>>, vector<1x4xf32>
      %57 = vector.broadcast %56 : vector<1x4xf32> to vector<3x4xf32>
      %58 = arith.addf %55, %57 : vector<3x4xf32>
      %cst_43 = arith.constant dense<0xFF800000> : vector<3xf32>
      %59 = vector.multi_reduction <maximumf>, %58, %cst_43 [1] : vector<3x4xf32> to vector<3xf32>
      %cst_44 = arith.constant 0xFF800000 : f32
      %60 = vector.broadcast %cst_44 : f32 to vector<3xf32>
      %61 = arith.maximumf %60, %59 : vector<3xf32>
      %62 = vector.shape_cast %61 : vector<3xf32> to vector<3x1xf32>
      %63 = vector.broadcast %62 : vector<3x1xf32> to vector<3x4xf32>
      %64 = arith.subf %58, %63 : vector<3x4xf32>
      %65 = math.exp %64 : vector<3x4xf32>
      %cst_45 = arith.constant dense<0.000000e+00> : vector<3xf32>
      %66 = vector.multi_reduction <add>, %65, %cst_45 [1] : vector<3x4xf32> to vector<3xf32>
      %67 = vector.shape_cast %66 : vector<3xf32> to vector<3x1xf32>
      %68 = vector.broadcast %67 : vector<3x1xf32> to vector<3x4xf32>
      %69 = arith.divf %65, %68 : vector<3x4xf32>
      %cst_46 = arith.constant dense<0xFF800000> : vector<3xf32>
      %70 = vector.multi_reduction <maximumf>, %69, %cst_46 [1] : vector<3x4xf32> to vector<3xf32>
      %cst_47 = arith.constant 0xFF800000 : f32
      %71 = vector.broadcast %cst_47 : f32 to vector<3xf32>
      %72 = arith.maximumf %71, %70 : vector<3xf32>
      %73 = vector.shape_cast %72 : vector<3xf32> to vector<3x1xf32>
      %74 = vector.broadcast %73 : vector<3x1xf32> to vector<3x4xf32>
      %75 = arith.subf %69, %74 : vector<3x4xf32>
      %76 = math.exp %75 : vector<3x4xf32>
      %cst_48 = arith.constant dense<0.000000e+00> : vector<3xf32>
      %77 = vector.multi_reduction <add>, %76, %cst_48 [1] : vector<3x4xf32> to vector<3xf32>
      %78 = vector.shape_cast %77 : vector<3xf32> to vector<3x1xf32>
      %79 = math.log %78 : vector<3x1xf32>
      %80 = vector.broadcast %79 : vector<3x1xf32> to vector<3x4xf32>
      %81 = arith.subf %75, %80 : vector<3x4xf32>
      %82 = arith.mulf %53, %81 : vector<3x4xf32>
      %cst_49 = arith.constant dense<0.000000e+00> : vector<3xf32>
      %83 = vector.multi_reduction <add>, %82, %cst_49 [1] : vector<3x4xf32> to vector<3xf32>
      %84 = vector.shape_cast %83 : vector<3xf32> to vector<3x1xf32>
      %cst_50 = arith.constant 0.000000e+00 : f32
      %85 = vector.broadcast %cst_50 : f32 to vector<3x1xf32>
      %86 = arith.subf %85, %84 : vector<3x1xf32>
      %87 = vector.shape_cast %86 : vector<3x1xf32> to vector<1x3x1xf32>
      %cst_51 = arith.constant dense<0.000000e+00> : vector<1xf32>
      %88 = vector.multi_reduction <add>, %87, %cst_51 [1, 2] : vector<1x3x1xf32> to vector<1xf32>
      %89 = vector.shape_cast %88 : vector<1xf32> to vector<1x1x1xf32>
      %90 = vector.extract %89[0, 0, 0] : f32 from vector<1x1x1xf32>
      %cst_52 = arith.constant 3.000000e+00 : f32
      %91 = arith.divf %90, %cst_52 : f32
      %c0_53 = arith.constant 0 : index
      %c0_54 = arith.constant 0 : index
      %92 = memref.load %arg9[%c0_53, %c0_54] : memref<1x1xf32, #tpu.memory_space<smem>>
      memref.store %91, %arg9[%c0_53, %c0_54] : memref<1x1xf32, #tpu.memory_space<smem>>
    } else {
    }
    return
  }
  func.func @transform_0(%arg0: i32) -> (i32, i32) {
    %c0_i32 = arith.constant 0 : i32
    %c0_i32_0 = arith.constant 0 : i32
    return %c0_i32, %arg0 : i32, i32
  }
  func.func @transform_1(%arg0: i32) -> (i32, i32) {
    %c0_i32 = arith.constant 0 : i32
    %c0_i32_0 = arith.constant 0 : i32
    return %arg0, %c0_i32 : i32, i32
  }
  func.func @transform_2(%arg0: i32) -> (i32, i32) {
    %c0_i32 = arith.constant 0 : i32
    %c0_i32_0 = arith.constant 0 : i32
    return %arg0, %c0_i32 : i32, i32
  }
  func.func @transform_3(%arg0: i32) -> (i32, i32) {
    %c0_i32 = arith.constant 0 : i32
    %c0_i32_0 = arith.constant 0 : i32
    return %arg0, %c0_i32 : i32, i32
  }
  func.func @transform_4(%arg0: i32) -> (i32, i32) {
    %c0_i32 = arith.constant 0 : i32
    %c0_i32_0 = arith.constant 0 : i32
    %c0_i32_1 = arith.constant 0 : i32
    return %c0_i32, %c0_i32_0 : i32, i32
  }
  func.func @transform_5(%arg0: i32) -> (i32, i32) {
    %c0_i32 = arith.constant 0 : i32
    %c0_i32_0 = arith.constant 0 : i32
    %c0_i32_1 = arith.constant 0 : i32
    return %c0_i32, %c0_i32_0 : i32, i32
  }
  func.func @transform_6(%arg0: i32) -> (i32, i32) {
    %c0_i32 = arith.constant 0 : i32
    %c0_i32_0 = arith.constant 0 : i32
    %c0_i32_1 = arith.constant 0 : i32
    return %c0_i32, %c0_i32_0 : i32, i32
  }
  func.func @transform_7(%arg0: i32) -> (i32, i32) {
    %c0_i32 = arith.constant 0 : i32
    %c0_i32_0 = arith.constant 0 : i32
    %c0_i32_1 = arith.constant 0 : i32
    return %c0_i32, %c0_i32_0 : i32, i32
  }
  func.func @transform_8(%arg0: i32) -> (i32, i32) {
    %c0_i32 = arith.constant 0 : i32
    %c0_i32_0 = arith.constant 0 : i32
    %c0_i32_1 = arith.constant 0 : i32
    return %c0_i32, %c0_i32_0 : i32, i32
  }
}

</mosaic_0001>

<bundles_post_ra>
// kernel: tpu_custom_call.1
= control target key start
LH: loop header
LB: loop body
LE: loop exit
PB: predicated region body
PF: predicated region fallthrough
CT: control target
= control target key end

     0   :  { %vm53_vm0 = vcmask 130048   ;;  %v67_v2 = vlaneseq  ;;  %v472_v5 = vmov 0.0   ;;  %s582_s0 = inlined_call_operand.vmem [shape: s32[1,8], index: 0, kind: input, shape index: {}]   ;;  %s583_s1 = inlined_call_operand.vmem [shape: f32[8,32], index: 1, kind: input, shape index: {}]   ;;  %s584_s2 = inlined_call_operand.vmem [shape: f32[8,16], index: 2, kind: input, shape index: {}]   ;;  %s585_s3 = inlined_call_operand.vmem [shape: f32[8,4], index: 3, kind: input, shape index: {}]   ;;  %s586_s4 = inlined_call_operand.vmem [shape: f32[1,16], index: 4, kind: input, shape index: {}]   ;;  %s587_s5 = inlined_call_operand.<no memory space> [shape: f32[1,1], index: 5, kind: input, shape index: {}]   ;;  %s588_s6 = inlined_call_operand.vmem [shape: f32[32,4], index: 6, kind: input, shape index: {}]   ;;  %s589_s7 = inlined_call_operand.vmem [shape: f32[1,4], index: 7, kind: input, shape index: {}]   ;;  %s590_s8 = inlined_call_operand.hbm [shape: f32[1,1], index: 8, kind: output, shape index: {}]  }
   0x1   :  { %v42_v0 = vld [vmem:[%s584_s2] sm:$0xff]  ;;  %410 = vmatprep.subr.mxu1 %v472_v5 }
   0x2   :  { %v393_v1 = vld [vmem:[%s586_s4] ss:$0 sm:$0xff] }
   0x3   :  { %v52_v3 = vmul.f32 %v393_v1, %v42_v0  ;;  %v395_v4 = vld [vmem:[%s582_s0] ss:$0 sm:$0xff] }
   0x4   :  { %14 = vsyncpa [#allocation7], 0  ;;  %v68_v6 = vshrl.u32 %v67_v2, 7  ;;  %vm229_vm1 = vcmask 59392   ;;  %vm473_vm3 = vmmov 0   ;;  %vm39_vm4 = vcmask 2048  }
   0x5   :  { %v54_v7 = vsel %vm53_vm0, %v52_v3, 0.0  ;;  %412 = vmatprep.mubr.msk.f32.mxu1 %vm473_vm3, %v472_v5  ;;  %428 = vmatprep.mubr.msk.f32.mxu0 %vm473_vm3, %v472_v5  ;;  %vm35_vm5 = vcmask 256000   ;;  %40 = vst.msk [vmem:[#allocation4] sm:$0x7] %vm39_vm4, %v472_v5  ;;  %v474_v10 = vmov 0   ;;  %v58_v11 = vstv %s587_s5  ;;  %v41_v22 = vld [vmem:[%s583_s1] sm:$0xff] }
   0x6   :  { %55 = vadd.xlane.f32.xlu0 %v54_v7  ;;  %vm73_vm2 = vcmp.eq.s32.totalorder %v68_v6, %v395_v4  ;;  %444 = vset.pattern.permute.xlu1 %v474_v10  ;;  %36 = vst.msk [vmem:[#allocation2] sm:$0x7] %vm35_vm5, %v472_v5  ;;  %vm77_vm6 = vcmask 64512   ;;  %v43_v26 = vld [vmem:[%s585_s3] sm:$0xff]  ;;  %vm37_vm7 = vcmask 26624   ;;  %v253_v28 = vld [vmem:[%s588_s6 + $0x8] sm:$0xff] }
   0x7   :  { %v396_v8 = vsel %vm73_vm2, 1.0, %v472_v5  ;;  %445 = vset.pattern.permute.xlu0 %v474_v10  ;;  %38 = vst.msk [vmem:[#allocation3] sm:$0x7] %vm37_vm7, %v472_v5  ;;  %v252_v27 = vld [vmem:[%s588_s6] sm:$0xff]  ;;  %v475_v30 = vmov 0.0|0.0   ;;  %v254_v31 = vld [vmem:[%s588_s6 + $0x10] sm:$0xff] }
   0x8   :  { %v230_v9 = vsel %vm229_vm1, %v396_v8, 0.0  ;;  %v432_v29 = vpack.c.bf16 %v253_v28, %v252_v27  ;;  %431 = vmatprep.subr.bf16.mxu0 %v475_v30  ;;  %v255_v32 = vld [vmem:[%s588_s6 + $0x18] sm:$0xff]  ;;  %vm263_vm8 = vcmask 261120   ;;  %v399_v45 = vld [vmem:[%s589_s7] ss:$0 sm:$0xff]  ;;  %s460_s23 = scalar_lea.hbm %s590_s8, 16 }
   0x9   :  { %v435_v33 = vpack.c.bf16 %v255_v32, %v254_v31  ;;  %p461_p0 = scmp.ne.s32.totalorder %s590_s8, %s460_s23  ;;  %p464_p1 = scmp.lt.u32.totalorder %s460_s23, %s590_s8 }
   0xa   :  { %231 = vadd.xlane.f32.xlu0 %v230_v9  ;;  %433 = vmatpush3.bf16.msra.mxu0 %v432_v29 }
   0xb   :  { %434 = vmatprep.subr.bf16.mxu0 %v475_v30  ;;  %p466_p2 = pnand %p464_p1, %p461_p0 }
   0xc   :  { %v228_v14 = vld [vmem:[#allocation4] sm:$0x7] }
   0xd   :  { %v76_v34 = vld [vmem:[#allocation2] sm:$0x7] }
   0xe   :  { %436 = vmatpush3.bf16.msra.mxu0 %v435_v33  ;;  %v154_v38 = vld [vmem:[#allocation3] sm:$0x7] }
  0x93   :  { %v56_v12 = vpop.xlane.xlu0 %55 }
  0x94   :  { %v59_v13 = vadd.f32 %v58_v11, %v56_v12 }
  0x96   :  { %v394_v15 = vmul.f32 -1.442695, %v59_v13 }
  0x97   :  { %v232_v16 = vpop.xlane.xlu0 %231 }
  0x98   :  { %446 = vpow2.f32 %v394_v15  ;;  %v233_v17 = vadd.f32 %v232_v16, %v228_v14 }
  0x9a   :  { %235 = vst.msk [vmem:[#allocation4] sm:$0x7] %vm39_vm4, %v233_v17 }
  0xa1   :  { %v239_v18 = vld [vmem:[#allocation4] sm:$0x7] }
  0xa2   :  { %v447_v19 = vpop.eup %446  ;;  %v240_v20 = vmax.f32 %v239_v18, 1.0 }
  0xa3   :  { %v63_v21 = vadd.f32 1.0, %v447_v19 }
  0xa4   :  { %448 = vrcp.f32 %v240_v20 }
  0xa5   :  { %450 = vrcp.f32 %v63_v21 }
  0xae   :  { %v449_v23 = vpop.eup %448 }
  0xaf   :  { %v451_v24 = vpop.eup %450  ;;  %246 = vperm.xlu1 %444, %v449_v23  }
  0xb0   :  { %v66_v25 = vmul.f32 %v451_v24, %v41_v22 }
  0xb2   :  { %411 = vmatpush3.msra.mxu1 %v66_v25 }
  0xb3   :  { %413 = vmatmul.mubr.msk.f32.vlgmr.msra.gmra.mrb[0].mxu1 %vm77_vm6, %v396_v8  ;;  %415 = vmatprep.subr.mxu1 %v472_v5 }
  0xb4   :  { %416 = vmatpush3.msra.mxu1 %v43_v26  ;;  %417 = vmatprep.mubr.msk.f32.mxu1 %vm473_vm3, %v472_v5 }
  0xb7   :  { %418 = vmatmul.mubr.msk.f32.vlgmr.msra.gmra.mrb[2].mxu1 %vm77_vm6, %v396_v8 }
 0x12e   :  { %v247_v42 = vpop.permute.xlu1 %246 }
 0x186   :  { %v147_v35 = vpop.f32.mrb[0].mxu1 }
 0x187   :  { %v151_v36 = vadd.f32 %v147_v35, %v76_v34  ;;  %v414_v37 = vpop.f32.mrb[1].mxu1 }
 0x189   :  { %153 = vst.msk [vmem:[#allocation2] sm:$0x7] %vm35_vm5, %v151_v36 }
 0x18a   :  { %v221_v39 = vpop.f32.mrb[2].mxu1 }
 0x18b   :  { %v225_v40 = vadd.f32 %v221_v39, %v154_v38  ;;  %v419_v41 = vpop.f32.mrb[3].mxu1 }
 0x18d   :  { %227 = vst.msk [vmem:[#allocation3] sm:$0x7] %vm37_vm7, %v225_v40 }
 0x190   :  { %v243_v43 = vld [vmem:[#allocation2] sm:$0x7] }
 0x191   :  { %v249_v44 = vmul.f32 %v247_v42, %v243_v43 }
 0x193   :  { %429 = vmatmul.mubr.msk.f32.vlgmr.msra.gmra.mrb[0].mxu0 %vm263_vm8, %v249_v44 }
 0x194   :  { %v250_v2 = vld [vmem:[#allocation3] sm:$0x7] }
 0x195   :  { %v251_v4 = vmul.f32 %v250_v2, %v247_v42 }
 0x266   :  { %v333_v46 = vpop.f32.mrb[0].mxu0 }
 0x267   :  { %v334_v47 = vadd.f32 %v399_v45, %v333_v46  ;;  %v430_v48 = vpop.f32.mrb[1].mxu0 }
 0x269   :  { %v337_v49 = vsel %vm37_vm7, %v334_v47, -inf }
 0x26a   :  { %338 = vmax.xlane.f32.xlu1 %v337_v49 }
 0x2f7   :  { %v339_v50 = vpop.xlane.xlu1 %338 }
 0x2f8   :  { %v340_v51 = vsub.f32 %v334_v47, %v339_v50 }
 0x2fa   :  { %v341_v52 = vmul.f32 1.442695, %v340_v51 }
 0x2fc   :  { %452 = vpow2.f32 %v341_v52 }
 0x306   :  { %v453_v53 = vpop.eup %452 }
 0x307   :  { %v343_v54 = vsel %vm37_vm7, %v453_v53, 0.0 }
 0x308   :  { %344 = vadd.xlane.f32.xlu0 %v343_v54 }
 0x395   :  { %v345_v55 = vpop.xlane.xlu0 %344 }
 0x396   :  { %454 = vrcp.f32 %v345_v55 }
 0x3a0   :  { %v455_v56 = vpop.eup %454 }
 0x3a1   :  { %v347_v57 = vmul.f32 %v455_v56, %v453_v53 }
 0x3a3   :  { %v348_v58 = vsel %vm37_vm7, %v347_v57, -inf }
 0x3a4   :  { %349 = vmax.xlane.f32.xlu0 %v348_v58 }
 0x431   :  { %v350_v59 = vpop.xlane.xlu0 %349 }
 0x432   :  { %v351_v60 = vsub.f32 %v347_v57, %v350_v59 }
 0x434   :  { %v352_v61 = vmul.f32 1.442695, %v351_v60 }
 0x436   :  { %456 = vpow2.f32 %v352_v61 }
 0x440   :  { %v457_v62 = vpop.eup %456 }
 0x441   :  { %v354_v63 = vsel %vm37_vm7, %v457_v62, 0.0 }
 0x442   :  { %355 = vadd.xlane.f32.xlu0 %v354_v63 }
 0x4cf   :  { %v356_v0 = vpop.xlane.xlu0 %355 }
 0x4d0   :  { %458 = vlog2.f32 %v356_v0 }
 0x4da   :  { %v459_v1 = vpop.eup %458 }
 0x4db   :  { %v358_v3 = vmul.f32 0.6931472, %v459_v1 }
 0x4dd   :  { %v359_v5 = vsub.f32 %v351_v60, %v358_v3 }
 0x4df   :  { %v360_v6 = vmul.f32 %v359_v5, %v251_v4 }
 0x4e1   :  { %v361_v7 = vsel %vm37_vm7, %v360_v6, 0.0 }
 0x4e2   :  { %362 = vadd.xlane.f32.xlu0 %v361_v7 }
 0x56f   :  { %v363_v8 = vpop.xlane.xlu0 %362 }
 0x570   :  { %v364_v9 = vsub.f32 0.0, %v363_v8 }
 0x572   :  { %v365_v10 = vsel %vm39_vm4, %v364_v9, 0.0 }
 0x573   :  { %366 = vadd.xlane.f32.xlu0 %v365_v10 }
 0x600   :  { %v367_v11 = vpop.xlane.xlu0 %366 }
 0x601   :  { %v368_v12 = vrot.slane %v367_v11, 4 }
 0x603   :  { %v369_v13 = vadd.f32 %v368_v12, %v367_v11 }
 0x605   :  { %v370_v14 = vrot.slane %v369_v13, 2 }
 0x607   :  { %v371_v15 = vadd.f32 %v370_v14, %v369_v13 }
 0x609   :  { %v372_v16 = vrot.slane %v371_v15, 1 }
 0x60b   :  { %v373_v17 = vadd.f32 %v372_v16, %v371_v15 }
 0x60d   :  { %437 = vpush %v373_v17 }
 0x63e   :  { %s438_s7 = spop %437 }
 0x63f   :  { %s377_s20 = smul.f32 0.33333334, %s438_s7 }
 0x641   :  { %379 = sst [smem:[#allocation6]] %s377_s20 }
 0x642   :  { %469 = shalt.err (!%p466_p2)
}
 0x643   :  { %s476_s28 = smov [#allocation6]  }
 0x644   :  { %387 = dma.smem_to_hbm %s476_s28, 16, %s590_s8, [#allocation7]  }
 0x645   :  { %470 = dma.done.wait [#allocation7], 16  }
 0x646   :  { %471 = vsyncadd [#allocation7], 4294967280 }
 0x647   :  { %391 = sfence }
 0x648   :  { %392 = vsyncpa [#allocation7], 1 }

</bundles_post_ra>
